<compile_context>
chip_gen: v5e
topology: v5e:2x2
jax: 0.10.0
libtpu: 0.0.40
codegen_flags: <defaults>
</compile_context>

<pallas_src>
import math
import jax
import jax.numpy as jnp
import numpy as np
from jax.experimental import pallas as pl
from jax.experimental.pallas import tpu as pltpu


# ----------------------------- helpers ------------------------------------ #
def _pair(v):
    if isinstance(v, (tuple, list)):
        return tuple(v)
    return (v, v)


def _out_size(in_size, pad, kernel, stride, dilation):
    k_eff = dilation * (kernel - 1) + 1
    return (in_size + 2 * pad - k_eff) // stride + 1


def _vmem_capacity_bytes():
    """Per-core VMEM capacity; conservative fallback if the query fails."""
    try:
        return int(pltpu.get_tpu_info().vmem_capacity_bytes)
    except Exception:
        return 64 * 1024 * 1024   # v7x-sized fallback (safe everywhere)


def _pick_tiles(O, CK, P_pad, op_itemsize, budget_bytes):
    """VMEM-aware (TM, TK, TN, CK_pad) selection."""
    # --- M (output-channel) tile: bound weight/out VMEM independently of O.
    TM = O
    for cand in (512, 256, 128):
        if O > cand and O % cand == 0:
            TM = cand
            break

    # --- K (reduction) tile: keep all of CK resident when small, otherwise
    # tile at 512 so VMEM no longer scales with C*K (large-C DCN layers).
    if CK <= 1024:
        TK, CK_pad = CK, CK
    else:
        TK = 512
        CK_pad = ((CK + TK - 1) // TK) * TK

    # --- N (spatial) tile: largest lane-dense width that divides P_pad and
    # fits the per-generation VMEM budget (double-buffered col/out/weight +
    # accumulator scratch).
    def vmem_use(tn):
        col = 2 * TK * tn * op_itemsize
        out = 2 * TM * tn * 4
        wgt = 2 * TM * TK * op_itemsize
        acc = TM * tn * 4
        bias = 2 * TM * 4
        return col + out + wgt + acc + bias

    TN = 128
    for cand in (1024, 512, 256, 128):
        if P_pad % cand == 0 and vmem_use(cand) <= budget_bytes:
            TN = cand
            break
    return TM, TK, TN, CK_pad


# ----------------------------- Pallas kernel ------------------------------ #
def _dcn_matmul_kernel(w_ref, b_ref, col_ref, o_ref, acc_ref):
    # Grid = (B, M, N, K); K (reduction over C*kh*kw) is innermost.
    @pl.when(pl.program_id(3) == 0)
    def _():
        acc_ref[...] = jnp.zeros_like(acc_ref)

    acc_ref[...] += jnp.dot(w_ref[...], col_ref[...],
                            preferred_element_type=jnp.float32)

    @pl.when(pl.program_id(3) == pl.num_programs(3) - 1)
    def _():
        o_ref[...] = (acc_ref[...] + b_ref[...]).astype(o_ref.dtype)


# ------------------ mask-modulated bilinear sampling (XLA) ----------------- #
def _sample_modulated(x, offset, mask, kh, kw, stride, padding, dilation,
                      G, Ho, Wo):
    """samp[b, g, cg, k, ho, wo] = mask * bilinear(x, p + offset)."""
    B, C, H, W = x.shape
    K = kh * kw
    Cg = C // G
    P = Ho * Wo
    xf = x.astype(jnp.float32)

    off = offset.reshape(B, G, K, 2, Ho, Wo).astype(jnp.float32)
    msk = mask.reshape(B, G, K, Ho, Wo).astype(jnp.float32)

    ki = (jnp.arange(K) // kw).astype(jnp.float32)
    kj = (jnp.arange(K) % kw).astype(jnp.float32)
    ho = jnp.arange(Ho, dtype=jnp.float32)
    wo = jnp.arange(Wo, dtype=jnp.float32)

    y = (ho[None, None, None, :, None] * stride[0] - padding[0]
         + ki[None, None, :, None, None] * dilation[0] + off[:, :, :, 0])
    xx = (wo[None, None, None, None, :] * stride[1] - padding[1]
          + kj[None, None, :, None, None] * dilation[1] + off[:, :, :, 1])

    valid = (y > -1) & (xx > -1) & (y < H) & (xx < W)
    y0 = jnp.floor(y)
    x0 = jnp.floor(xx)
    ly = y - y0
    lx = xx - x0
    hy = 1.0 - ly
    hx = 1.0 - lx
    y0i = y0.astype(jnp.int32)
    x0i = x0.astype(jnp.int32)
    y1i = y0i + 1
    x1i = x0i + 1

    xg = xf.reshape(B, G, Cg, H * W)

    def flat(a):
        return a.reshape(B, G, 1, K * P)

    def gather(yi, xi):
        inb = (yi >= 0) & (yi <= H - 1) & (xi >= 0) & (xi <= W - 1)
        idx = jnp.clip(yi, 0, H - 1) * W + jnp.clip(xi, 0, W - 1)
        # (B, G, 1, K*P) index broadcasts over the Cg axis of xg, so the int32
        # index tensor is NOT replicated Cg times (Cg becomes a gathered slice).
        v = jnp.take_along_axis(xg, flat(idx), axis=3)       # (B, G, Cg, K*P)
        return v * flat(inb.astype(jnp.float32))

    samp = (flat(hy * hx) * gather(y0i, x0i) + flat(hy * lx) * gather(y0i, x1i)
            + flat(ly * hx) * gather(y1i, x0i) + flat(ly * lx) * gather(y1i, x1i))
    modw = flat(valid.astype(jnp.float32) * msk)   # zero invalid + modulation
    samp = samp * modw                             # (B, G, Cg, K*P)
    return samp.reshape(B, G, Cg, K, Ho, Wo)


# ------------------------------ JAX glue ----------------------------------- #
def modulated_deform_conv_pallas(x, offset, mask, weight, bias,
                                 stride=1, padding=0, dilation=1,
                                 deformable_groups=1,
                                 compute_dtype=jnp.float32):
    stride = _pair(stride)
    padding = _pair(padding)
    dilation = _pair(dilation)

    B, C, H, W = x.shape
    O, _, kh, kw = weight.shape
    K = kh * kw
    G = deformable_groups
    Ho = _out_size(H, padding[0], kh, stride[0], dilation[0])
    Wo = _out_size(W, padding[1], kw, stride[1], dilation[1])
    P = Ho * Wo
    CK = C * K

    # --- mask-modulated bilinear im2col, emitted directly in (B, CK, P) ----
    samp = _sample_modulated(x, offset, mask, kh, kw, stride, padding,
                             dilation, G, Ho, Wo)
    col = samp.reshape(B, CK, P)            # row = c*K + k, matches weight

    # --- padding / tiling ---------------------------------------------------
    P_pad = ((P + 127) // 128) * 128        # lane-dense output stores
    op_itemsize = jnp.dtype(compute_dtype).itemsize
    cap = _vmem_capacity_bytes()
    budget = int(cap * 0.45)                # headroom for internal scratch
    vmem_limit = int(cap * 0.75)
    TM, TK, TN, CK_pad = _pick_tiles(O, CK, P_pad, op_itemsize, budget)

    col = jnp.pad(col, ((0, 0), (0, CK_pad - CK), (0, P_pad - P)))
    col = col.astype(compute_dtype)
    w2d = jnp.pad(weight.reshape(O, CK).astype(jnp.float32),
                  ((0, 0), (0, CK_pad - CK))).astype(compute_dtype)
    b2d = bias.reshape(O, 1).astype(jnp.float32)

    grid = (B, O // TM, P_pad // TN, CK_pad // TK)

    flops = 2 * O * CK_pad * B * P_pad
    bytes_accessed = (op_itemsize * B * CK_pad * P_pad     # col
                      + 4 * B * O * P_pad                  # out (f32)
                      + op_itemsize * O * CK_pad           # weight
                      + 4 * O)                             # bias

    out_all = pl.pallas_call(
        _dcn_matmul_kernel,
        out_shape=jax.ShapeDtypeStruct((B, O, P_pad), jnp.float32),
        grid_spec=pltpu.PrefetchScalarGridSpec(
            num_scalar_prefetch=0,
            grid=grid,
            in_specs=[
                # weight tile: varies only with (m, k)
                pl.BlockSpec((TM, TK), lambda b, m, n, k: (m, k)),
                # bias tile: varies only with m
                pl.BlockSpec((TM, 1), lambda b, m, n, k: (m, 0)),
                # im2col columns: batch plane selected by index_map (no XLA
                # transpose), squeezed out of the kernel ref
                pl.BlockSpec((None, TK, TN), lambda b, m, n, k: (b, k, n)),
            ],
            out_specs=pl.BlockSpec((None, TM, TN), lambda b, m, n, k: (b, m, n)),
            scratch_shapes=[pltpu.VMEM((TM, TN), jnp.float32)],
        ),
        compiler_params=pltpu.CompilerParams(
            dimension_semantics=("parallel", "parallel", "parallel",
                                 "arbitrary"),
            vmem_limit_bytes=vmem_limit),
        cost_estimate=pl.CostEstimate(flops=flops,
                                      transcendentals=0,
                                      bytes_accessed=bytes_accessed),
    )(w2d, b2d, col)

    return out_all[:, :, :P].reshape(B, O, Ho, Wo)


# --------------------------- pure-JAX reference ----------------------------- #
def modulated_deform_conv_ref(x, offset, mask, weight, bias,
                              stride, padding, dilation, G):
    stride = _pair(stride)
    padding = _pair(padding)
    dilation = _pair(dilation)
    B, C, H, W = x.shape
    O, _, kh, kw = weight.shape
    K = kh * kw
    Cg = C // G
    Ho = _out_size(H, padding[0], kh, stride[0], dilation[0])
    Wo = _out_size(W, padding[1], kw, stride[1], dilation[1])

    samp = _sample_modulated(x, offset, mask, kh, kw, stride, padding,
                             dilation, G, Ho, Wo)
    wg = weight.reshape(O, G, Cg, K).astype(jnp.float32)
    out = jnp.einsum('ogck,bgckhw->bohw', wg, samp)
    return out + bias.astype(jnp.float32)[None, :, None, None]


# --------------------------------- main ------------------------------------- #
if __name__ == "__main__":
    # ModulatedDeformConv(in_channels=4, out_channels=8, kernel_size=3,
    #                     stride=1, padding=1, dilation=1,
    #                     deformable_groups=1, no_bias=True)
    B, C, H, W = 2, 4, 16, 16
    O, kh, kw = 8, 3, 3
    stride, padding, dilation, G = 1, 1, 1, 1
    K = kh * kw
    Ho = _out_size(H, padding, kh, stride, dilation)
    Wo = _out_size(W, padding, kw, stride, dilation)

    key = jax.random.PRNGKey(0)
    kx, ko, km, kw_key = jax.random.split(key, 4)
    x = jax.random.normal(kx, (B, C, H, W), dtype=jnp.float32)
    # offsets roughly in [-1.5, 1.5]
    offset = 1.5 * (2.0 * jax.random.uniform(
        ko, (B, G * 2 * K, Ho, Wo), dtype=jnp.float32) - 1.0)
    # modulation mask in [0, 1] (sigmoid-like range)
    mask = jax.random.uniform(km, (B, G * K, Ho, Wo), dtype=jnp.float32)
    # reset_parameters(): uniform(-stdv, stdv), stdv = 1/sqrt(C*kh*kw)
    stdv = 1.0 / math.sqrt(C * kh * kw)
    weight = jax.random.uniform(kw_key, (O, C, kh, kw), dtype=jnp.float32,
                                minval=-stdv, maxval=stdv)
    bias = jnp.zeros((O,), jnp.float32)   # no_bias=True -> zero bias

    ref = modulated_deform_conv_ref(x, offset, mask, weight, bias,
                                    stride, padding, dilation, G)

    # f32 operand path (tight tolerance)
    out_f32 = modulated_deform_conv_pallas(x, offset, mask, weight, bias,
                                           stride, padding, dilation, G,
                                           compute_dtype=jnp.float32)
    out_f32 = jax.block_until_ready(out_f32)
    np.testing.assert_allclose(np.asarray(out_f32), np.asarray(ref),
                               rtol=1e-4, atol=1e-4)

    # bf16 operand path (halves the dominant col DMA stream on this
    # memory-bound GEMM; accumulation stays f32) -> looser tolerance.
    out_bf16 = modulated_deform_conv_pallas(x, offset, mask, weight, bias,
                                            stride, padding, dilation, G,
                                            compute_dtype=jnp.bfloat16)
    out_bf16 = jax.block_until_ready(out_bf16)
    np.testing.assert_allclose(np.asarray(out_bf16), np.asarray(ref),
                               rtol=2e-2, atol=2e-2)

    print("KERNEL_OK")
</pallas_src>

<mosaic_0001>
module attributes {stable_mosaic.version = 11 : i64} {
  func.func @_dcn_matmul_kernel(%arg0: i32, %arg1: i32, %arg2: i32, %arg3: i32, %arg4: memref<8x36xf32, #tpu.memory_space<vmem>>, %arg5: memref<8x1xf32, #tpu.memory_space<vmem>>, %arg6: memref<1x36x256xf32, #tpu.memory_space<vmem>>, %arg7: memref<1x8x256xf32, #tpu.memory_space<vmem>>, %arg8: memref<8x256xf32, #tpu.memory_space<vmem>>) attributes {dimension_semantics = [#tpu.dimension_semantics<parallel>, #tpu.dimension_semantics<parallel>, #tpu.dimension_semantics<parallel>, #tpu.dimension_semantics<arbitrary>], iteration_bounds = array<i64: 2, 1, 1, 1>, scalar_prefetch = 0 : i64, scratch_operands = 1 : i64, tpu.core_type = #tpu.core_type<tc>, window_params = [{transform_indices = @transform_0, window_bounds = array<i64: 8, 36>}, {transform_indices = @transform_1, window_bounds = array<i64: 8, 1>}, {transform_indices = @transform_2, window_bounds = array<i64: 1, 36, 256>}, {transform_indices = @transform_3, window_bounds = array<i64: 1, 8, 256>}]} {
    %c0_i32 = arith.constant 0 : i32
    %0 = arith.cmpi eq, %arg3, %c0_i32 : i32
    %1 = arith.extui %0 : i1 to i32
    %c0_i32_0 = arith.constant 0 : i32
    %2 = arith.cmpi ne, %1, %c0_i32_0 : i32
    scf.if %2 {
      %cst_11 = arith.constant 0.000000e+00 : f32
      %13 = vector.broadcast %cst_11 : f32 to vector<8x256xf32>
      %c0_12 = arith.constant 0 : index
      %c0_13 = arith.constant 0 : index
      %14 = vector.load %arg8[%c0_12, %c0_13] : memref<8x256xf32, #tpu.memory_space<vmem>>, vector<8x256xf32>
      tpu.vector_store %arg8[%c0_12, %c0_13], %13 {strides = array<i32>} : memref<8x256xf32, #tpu.memory_space<vmem>>, vector<8x256xf32>,
    } else {
    }
    %c0 = arith.constant 0 : index
    %c0_1 = arith.constant 0 : index
    %3 = vector.load %arg8[%c0, %c0_1] : memref<8x256xf32, #tpu.memory_space<vmem>>, vector<8x256xf32>
    %c0_2 = arith.constant 0 : index
    %c0_3 = arith.constant 0 : index
    %4 = vector.load %arg4[%c0_2, %c0_3] : memref<8x36xf32, #tpu.memory_space<vmem>>, vector<8x36xf32>
    %c0_4 = arith.constant 0 : index
    %c0_5 = arith.constant 0 : index
    %c0_6 = arith.constant 0 : index
    %5 = vector.load %arg6[%c0_4, %c0_5, %c0_6] : memref<1x36x256xf32, #tpu.memory_space<vmem>>, vector<1x36x256xf32>
    %6 = vector.shape_cast %5 : vector<1x36x256xf32> to vector<36x256xf32>
    %cst = arith.constant dense<0.000000e+00> : vector<8x256xf32>
    %7 = tpu.matmul %4, %6, %cst {dimension_numbers = #tpu.dot_dimension_numbers<[1], [0], [0], [1], [0, 0, 1, 1], [], []>} : vector<8x36xf32>, vector<36x256xf32>, vector<8x256xf32> -> vector<8x256xf32>
    %8 = arith.addf %3, %7 : vector<8x256xf32>
    %c0_7 = arith.constant 0 : index
    %c0_8 = arith.constant 0 : index
    %9 = vector.load %arg8[%c0_7, %c0_8] : memref<8x256xf32, #tpu.memory_space<vmem>>, vector<8x256xf32>
    tpu.vector_store %arg8[%c0_7, %c0_8], %8 {strides = array<i32>} : memref<8x256xf32, #tpu.memory_space<vmem>>, vector<8x256xf32>,
    %c0_i32_9 = arith.constant 0 : i32
    %10 = arith.cmpi eq, %arg3, %c0_i32_9 : i32
    %11 = arith.extui %10 : i1 to i32
    %c0_i32_10 = arith.constant 0 : i32
    %12 = arith.cmpi ne, %11, %c0_i32_10 : i32
    scf.if %12 {
      %c0_11 = arith.constant 0 : index
      %c0_12 = arith.constant 0 : index
      %13 = vector.load %arg8[%c0_11, %c0_12] : memref<8x256xf32, #tpu.memory_space<vmem>>, vector<8x256xf32>
      %c0_13 = arith.constant 0 : index
      %c0_14 = arith.constant 0 : index
      %14 = vector.load %arg5[%c0_13, %c0_14] : memref<8x1xf32, #tpu.memory_space<vmem>>, vector<8x1xf32>
      %15 = vector.broadcast %14 : vector<8x1xf32> to vector<8x256xf32>
      %16 = arith.addf %13, %15 : vector<8x256xf32>
      %c0_15 = arith.constant 0 : index
      %c0_16 = arith.constant 0 : index
      %c0_17 = arith.constant 0 : index
      %17 = vector.load %arg7[%c0_15, %c0_16, %c0_17] : memref<1x8x256xf32, #tpu.memory_space<vmem>>, vector<1x8x256xf32>
      %18 = vector.shape_cast %17 : vector<1x8x256xf32> to vector<8x256xf32>
      %19 = vector.shape_cast %16 : vector<8x256xf32> to vector<1x8x256xf32>
      tpu.vector_store %arg7[%c0_15, %c0_16, %c0_17], %19 {strides = array<i32>} : memref<1x8x256xf32, #tpu.memory_space<vmem>>, vector<1x8x256xf32>,
    } else {
    }
    return
  }
  func.func @transform_0(%arg0: i32, %arg1: i32, %arg2: i32, %arg3: i32) -> (i32, i32) {
    %c0_i32 = arith.constant 0 : i32
    return %arg1, %arg3 : i32, i32
  }
  func.func @transform_1(%arg0: i32, %arg1: i32, %arg2: i32, %arg3: i32) -> (i32, i32) {
    %c0_i32 = arith.constant 0 : i32
    %c0_i32_0 = arith.constant 0 : i32
    return %arg1, %c0_i32 : i32, i32
  }
  func.func @transform_2(%arg0: i32, %arg1: i32, %arg2: i32, %arg3: i32) -> (i32, i32, i32) {
    %c0_i32 = arith.constant 0 : i32
    return %arg0, %arg3, %arg2 : i32, i32, i32
  }
  func.func @transform_3(%arg0: i32, %arg1: i32, %arg2: i32, %arg3: i32) -> (i32, i32, i32) {
    %c0_i32 = arith.constant 0 : i32
    return %arg0, %arg1, %arg2 : i32, i32, i32
  }
}

</mosaic_0001>

<bundles_post_ra>
// kernel: tpu_custom_call.1
= control target key start
LH: loop header
LB: loop body
LE: loop exit
PB: predicated region body
PF: predicated region fallthrough
CT: control target
= control target key end

     0   :  { %8 = vsyncpa [#allocation4], 0  ;;  %s794_s0 = inlined_call_operand.vmem [shape: f32[8,36], index: 0, kind: input, shape index: {}]   ;;  %s795_s1 = inlined_call_operand.vmem [shape: f32[8,1], index: 1, kind: input, shape index: {}]   ;;  %s796_s2 = inlined_call_operand.vmem [shape: f32[2,36,256], index: 2, kind: input, shape index: {}]   ;;  %s797_s3 = inlined_call_operand.hbm [shape: f32[2,8,256], index: 3, kind: output, shape index: {}]  }
   0x1   :  { %10 = vsyncpa [#allocation4 + $0x1], 0  ;;  %s691_s12 = smov 0   ;;  %s693_s13 = smov 0  }
   0x2   :  { %s695_s14 = smov 0   ;;  %s697_s15 = smov 0  }
   0x3   :  { %s699_s16 = smov 0   ;;  %s701_s17 = smov 0  }
   0x4 LB: > { %s513_s18 = sadd.s32 4294967295, %s668_s17   ;;  %s514_s19 = sadd.s32 4294967294, %s668_s17   ;;  %s668_s17 = sphi %s701_s17, %s16_s17   ;;  %s664_s16 = sphi %s699_s16, %s804_s16   ;;  %s660_s15 = sphi %s697_s15, %s803_s15   ;;  %s656_s14 = sphi %s695_s14, %s802_s14   ;;  %s652_s13 = sphi %s693_s13, %s801_s13   ;;  %s648_s12 = sphi %s691_s12, %s800_s12  }
   0x5   : > { %s42_s20 = sadd.s32 1, %s664_s16  ;;  %s137_s21 = sadd.s32 1, %s656_s14 }
   0x6   : > { %p44_p0 = scmp.ge.s32.totalorder %s42_s20, 2  ;;  %p147_p1 = scmp.ne.s32.totalorder %s656_s14, %s652_s13 }
   0x7   : > { %p148_p2 = scmp.eq.s32.totalorder %s513_s18, 1  ;;  %p153_p3 = scmp.ne.s32.totalorder %s652_s13, %s648_s12 }
   0x8   : > { %s806_s20 = smov (%p44_p0, %s42_s20), 0  ;;  %p154_p5 = scmp.eq.s32.totalorder %s514_s19, 1 }
   0x9   : > { %p731_p4 = por %p148_p2, %p147_p1  ;;  %s130_s23 = ssub.s32 %s664_s16, %s806_s20 }
   0xa   : > { %p519_p6 = scmp.ge.s32.totalorder %s668_s17, 1  ;;  %p135_p7 = scmp.eq.s32.totalorder %s130_s23, 0 }
   0xb   : > { %p738_p8 = por %p154_p5, %p153_p3  ;;  %p208_p9 = scmp.lt.s32.totalorder %s668_s17, 3 }
   0xc   : > { %s744_s25 = scalar_select %p135_p7, %s656_s14, %s137_s21  }
   0xd   : > { %p209_p10 = pnand %p519_p6, %p208_p9 }
   0xe   : > { %p265_p11 = scmp.lt.s32.totalorder (!%p209_p10), %s660_s15, 1  ;;  %s249_s8 = sand.u32 (!%p209_p10), 1, %s652_s13  }
   0xf   : > { %212 = sbr.rel (%p209_p10) target bundleno = 167 (0xa7), region = 32  ;;  %s520_s9 = sshll.u32 (!%p209_p10), %s249_s8, 4 }
  0x10   : > { %s531_s10 = sshll.u32 (!%p209_p10), %s660_s15, 4  ;;  %s251_s21 = scalar_lea.vmem (!%p209_p10), [#allocation3], %s520_s9 }
  0x11   : > { %s385_s19 = scalar_lea.hbm (!%p209_p10), %s797_s3, %s531_s10  ;;  %s387_s23 = sshll.u32 (!%p209_p10), %s251_s21, 4  ;;  %s388_s23 = int_to_ptr.vmem [resolvable:$true] %s387_s23 }
  0x12   : > { %s389_s26 = sshll.u32 (!%p209_p10), %s385_s19, 4  ;;  %s370_s27 = scalar_lea.sflag (!%p209_p10), [#allocation4], %s249_s8  ;;  %s390_s26 = int_to_ptr.hbm [resolvable:$true] %s389_s26 }
  0x13   : > { %s610_s4 = scalar_lea.hbm (!%p209_p10), %s797_s3, 32 }
  0x14   : > { %v359_v0 = vld [vmem:[%s795_s1] sm:$0xff]  ;;  %v670_v1 = vmov 0   ;;  %s266_s28 = scalar_select %p265_p11, %s660_s15, 1  ;;  %vm303_vm0 = vcmask 1043456   ;;  %vm299_vm1 = vcmask 293888  }
  0x15   : > { %589 = vset.pattern.permute.xlu0 %v670_v1  ;;  %v288_v12 = vld [vmem:[%s794_s0] sm:$0xff] }
  0x16   : > { %362 = vperm.xlu0 %589, %v359_v0   ;;  %s532_s29 = smul.u32 80, %s266_s28  ;;  %s604_s28 = sshra.s32 %s390_s26, 4  ;;  %s605_s28 = int_to_ptr.hbm [resolvable:$true] %s604_s28 }
  0x17   : > { %s606_s15 = scalar_lea.hbm %s605_s28, 16  ;;  %p611_p1 = scmp.lt.s32.totalorder %s605_s28, %s797_s3 }
  0x18   : > { %s276_s5 = scalar_lea.vmem %s796_s2, %s532_s29  ;;  %p607_p12 = scmp.ne.s32.totalorder %s605_s28, %s606_s15 }
  0x19   : > { %v297_v2 = vld [vmem:[%s276_s5 + $0x40] sm:$0xf]  ;;  %v298_v3 = vld [vmem:[%s276_s5 + $0x48] sm:$0xf]  ;;  %v295_v4 = vld [vmem:[%s276_s5 + $0x30] sm:$0xff]  ;;  %p612_p2 = scmp.lt.s32.totalorder %s610_s4, %s606_s15 }
  0x1a   : > { %522 = vmatpush.msk.msra.mxu0 %vm303_vm0, %v297_v2  ;;  %524 = vmatpush.msk.msra.mxu1 %vm303_vm0, %v298_v3  ;;  %v296_v5 = vld [vmem:[%s276_s5 + $0x38] sm:$0xff]  ;;  %v293_v6 = vld [vmem:[%s276_s5 + $0x20] sm:$0xff]  ;;  %v294_v7 = vld [vmem:[%s276_s5 + $0x28] sm:$0xff]  ;;  %p608_p13 = pnand %p607_p12, %p731_p4 }
  0x1b   : > { %v291_v8 = vld [vmem:[%s276_s5 + $0x10] sm:$0xff]  ;;  %v292_v9 = vld [vmem:[%s276_s5 + $0x18] sm:$0xff]  ;;  %v289_v10 = vld [vmem:[%s276_s5] sm:$0xff]  ;;  %p613_p3 = por %p612_p2, %p611_p1 }
  0x1c   : > { %322 = vmatpush.msra.mxu0 %v295_v4  ;;  %342 = vmatpush.msra.mxu1 %v296_v5  ;;  %v290_v11 = vld [vmem:[%s276_s5 + $0x8] sm:$0xff]  ;;  %p609_p0 = pneg %p608_p13 }
  0x1e   : > { %323 = vmatpush.msra.mxu0 %v293_v6  ;;  %343 = vmatpush.msra.mxu1 %v294_v7  ;;  %p614_p5 = pnand %p613_p3, %p609_p0 }
  0x20   : > { %324 = vmatpush.msra.mxu0 %v291_v8  ;;  %344 = vmatpush.msra.mxu1 %v292_v9 }
  0x22   : > { %325 = vmatpush.msra.mxu0 %v289_v10  ;;  %345 = vmatpush.msra.mxu1 %v290_v11 }
  0x23   : > { %523 = vmatmul.msk.f32.vlgmr.msra.gmra.mxu0 %vm299_vm1, %v288_v12  ;;  %525 = vmatmul.msk.f32.vlgmr.msra.gmra.mxu1 %vm299_vm1, %v288_v12 }
  0x88   : > { %v363_v13 = vpop.permute.xlu0 %362 }
  0xa0   : > { %v327_v14 = vpop.f32.mrf.mxu0  ;;  %v347_v15 = vpop.f32.mrf.mxu1 }
  0xa1   : > { %v365_v16 = vadd.f32 %v363_v13, %v327_v14  ;;  %v366_v17 = vadd.f32 %v363_v13, %v347_v15 }
  0xa3   : > { %367 = vst [vmem:[%s251_s21] sm:$0xff] %v365_v16 }
  0xa4   : > { %368 = vst [vmem:[%s251_s21 + $0x8] sm:$0xff] %v366_v17 }
  0xa5   : > { %617 = shalt.err (!%p614_p5)
}
  0xa6   : > { %533 = dma.vmem_to_hbm [thread:$0]  (%p731_p4), %s388_s23, 256, %s390_s26, %s370_s27  }
  0xa7 PF: > { %p539_p6 = scmp.ge.s32.totalorder %s668_s17, 2  ;;  %s401_s7 = sand.u32 1, %s648_s12  }
  0xa8   : > { %s402_s8 = scalar_lea.sflag [#allocation4], %s401_s7 }
  0xa9   : > { %p536_p7 = pnand %p539_p6, %p738_p8 }
  0xab   : > { %p537_p9 = pneg %p536_p7 }
  0xad   : > { %643 = dma.done.wait (%p537_p9), %s402_s8, 256  }
  0xae   : > { %645 = vsyncadd (%p537_p9), %s402_s8, 4294967040  ;;  %s16_s17 = sadd.s32 1, %s668_s17   ;;  %s800_s12 = smov %s652_s13 }
  0xaf   : > { %p13_p10 = scmp.ge.s32.totalorder %s16_s17, 4   ;;  %s801_s13 = smov %s656_s14 }
  0xb0   : > { %s802_s14 = smov %s744_s25  ;;  %s803_s15 = smov %s664_s16 }
  0xb1   : > { %s804_s16 = smov %s806_s20  ;;  %15 = sbr.rel (!%p13_p10) target bundleno = 4 (0x4), region = 81 }
  0xb6   :  { %408 = vsyncpa [#allocation4], 1 }
  0xb7   :  { %410 = vsyncpa [#allocation4 + $0x1], 1 }

</bundles_post_ra>
